<compile_context>
chip_gen: v7x
topology: tpu7x:2x2x1
jax: 0.10.0
libtpu: 0.0.40
codegen_flags: <defaults>
</compile_context>

<pallas_src>
import jax
import jax.numpy as jnp
from jax import lax
from jax.experimental import pallas as pl
from jax.experimental.pallas import tpu as pltpu

EPS = 1e-5  # matches torch.nn.LayerNorm default
_MAX_TILE_ROWS = 4096


def _round_up(n, m):
    return ((n + m - 1) // m) * m


def _sublane_align(itemsize):
    # Rows per packed sublane tile: f32 -> 8, bf16 -> 16, int8/fp8 -> 32.
    return max(8, 8 * (4 // max(int(itemsize), 1)))


def _vmem_budgets():
    """Return (streaming-buffer budget, vmem_limit_bytes), per TPU generation."""
    cap = None
    try:
        cap = getattr(pltpu.get_tpu_info(), "vmem_capacity_bytes", None)
    except Exception:  # pragma: no cover - query unavailable (e.g. interpret)
        cap = None
    if cap is None or cap <= (80 << 20):
        # v7x: 64 MiB / TensorCore -> leave headroom for f32 temps + scratch.
        return 24 << 20, 48 << 20
    # v5e / v6e: 128 MiB VMEM -> larger tiles shave per-step overhead.
    return 56 << 20, 100 << 20


def _choose_tile_rows(rows, hidden, itemsize, stream_budget):
    """Pick a row-tile size (sublane-aligned for the I/O dtype) that keeps the
    pipelined streaming buffers + the in-kernel f32 intermediate under the
    VMEM budget, while leaving enough grid steps for v7x's two TensorCores."""
    align = _sublane_align(itemsize)
    # (2 in + 1 out) streams x 2 pipeline buffers in the I/O dtype,
    # plus the materialized f32 `z` intermediate (+ one f32 temp).
    bytes_per_row = 3 * 2 * hidden * itemsize + 2 * hidden * 4
    tr = stream_budget // max(bytes_per_row, 1)
    tr = min(_MAX_TILE_ROWS, (tr // align) * align)
    # Keep >= ~8 grid steps when the slab is big enough, so both v7x
    # TensorCores get row tiles (harmless extra steps on v5e/v6e).
    if rows > 8 * align:
        tr = min(tr, _round_up(pl.cdiv(rows, 8), align))
    # Never use a tile larger than the (sublane-padded) row count.
    tr = min(tr, _round_up(rows, align))
    return max(align, tr)


def addnorm_kernel(x_ref, y_ref, gb_ref, o_ref):
    # Residual add (dropout is identity in eval mode); all math in f32.
    z = x_ref[...].astype(jnp.float32) + y_ref[...].astype(jnp.float32)  # (TR, H)
    h = z.shape[-1]
    inv_h = 1.0 / h
    mean = jnp.sum(z, axis=-1, keepdims=True) * inv_h      # (TR, 1)
    zc = z - mean
    var = jnp.sum(zc * zc, axis=-1, keepdims=True) * inv_h  # two-pass (stable)
    inv = lax.rsqrt(var + EPS)                               # EUP rsqrt
    gb = gb_ref[...]                                         # (2, H) f32, resident
    o_ref[...] = (zc * inv * gb[0:1, :] + gb[1:2, :]).astype(o_ref.dtype)


def add_norm(x, y, gamma, beta, *, tile_rows=None):
    """x, y: (..., H); gamma, beta: (H,). Returns LayerNorm(y + x) over H.

    bf16 I/O is supported (and recommended on bandwidth-limited parts like
    v5e); all in-kernel accumulation is f32.
    """
    assert x.shape == y.shape
    orig_shape = x.shape
    H = x.shape[-1]
    rows = x.size // H
    x2 = x.reshape(rows, H)
    y2 = y.reshape(rows, H)
    # Hoist gamma/beta f32 casts out of the kernel; fold into one resident block.
    gb = jnp.stack(
        [gamma.astype(jnp.float32).reshape(H), beta.astype(jnp.float32).reshape(H)],
        axis=0,
    )  # (2, H) f32

    itemsize = jnp.dtype(x.dtype).itemsize
    stream_budget, vmem_limit = _vmem_budgets()
    tr = tile_rows or _choose_tile_rows(rows, H, itemsize, stream_budget)
    grid = (pl.cdiv(rows, tr),)  # ragged tail handled by Pallas edge blocks

    cost = pl.CostEstimate(
        flops=8 * rows * H,
        transcendentals=rows,                       # one rsqrt per row
        bytes_accessed=3 * rows * H * itemsize + 2 * H * 4,
    )

    out = pl.pallas_call(
        addnorm_kernel,
        out_shape=jax.ShapeDtypeStruct((rows, H), x.dtype),
        grid_spec=pl.GridSpec(
            grid=grid,
            in_specs=[
                pl.BlockSpec((tr, H), lambda i: (i, 0)),   # x tile
                pl.BlockSpec((tr, H), lambda i: (i, 0)),   # y tile
                pl.BlockSpec((2, H), lambda i: (0, 0)),    # gamma/beta (resident)
            ],
            out_specs=pl.BlockSpec((tr, H), lambda i: (i, 0)),
        ),
        compiler_params=pltpu.CompilerParams(
            dimension_semantics=("parallel",),
            vmem_limit_bytes=vmem_limit,
        ),
        cost_estimate=cost,
    )(x2, y2, gb)

    return out.reshape(orig_shape)


def reference_add_norm(x, y, gamma, beta):
    z = x.astype(jnp.float32) + y.astype(jnp.float32)
    mean = jnp.mean(z, axis=-1, keepdims=True)
    var = jnp.mean((z - mean) ** 2, axis=-1, keepdims=True)
    return (z - mean) * lax.rsqrt(var + EPS) * gamma + beta


if __name__ == "__main__":
    key = jax.random.PRNGKey(0)

    # Case 1: small, evenly-tiled f32 (batch=2, seq=8, hidden=32).
    B, S, H = 2, 8, 32
    kx, ky = jax.random.split(key)
    x = jax.random.normal(kx, (B, S, H), dtype=jnp.float32)
    y = jax.random.normal(ky, (B, S, H), dtype=jnp.float32)
    gamma = jnp.ones((H,), dtype=jnp.float32)   # nn.LayerNorm default init
    beta = jnp.zeros((H,), dtype=jnp.float32)

    out = jax.block_until_ready(add_norm(x, y, gamma, beta))
    ref = reference_add_norm(x, y, gamma, beta)
    assert out.shape == (B, S, H)
    assert jnp.allclose(out, ref, atol=1e-5, rtol=1e-5)

    # Case 2: rows not a multiple of the sublane/tile (exercises the ragged
    # edge-block path — no wrapper-side pad/slice anymore).
    B2, S2 = 3, 5  # rows = 15
    kx2, ky2 = jax.random.split(kx)
    x2 = jax.random.normal(kx2, (B2, S2, H), dtype=jnp.float32)
    y2 = jax.random.normal(ky2, (B2, S2, H), dtype=jnp.float32)
    out2 = jax.block_until_ready(add_norm(x2, y2, gamma, beta))
    ref2 = reference_add_norm(x2, y2, gamma, beta)
    assert out2.shape == (B2, S2, H)
    assert jnp.allclose(out2, ref2, atol=1e-5, rtol=1e-5)

    # Case 3: bf16 I/O with f32 accumulation inside the kernel.
    xb = x.astype(jnp.bfloat16)
    yb = y.astype(jnp.bfloat16)
    outb = jax.block_until_ready(add_norm(xb, yb, gamma, beta))
    refb = reference_add_norm(xb, yb, gamma, beta)
    assert outb.dtype == jnp.bfloat16
    assert jnp.allclose(outb.astype(jnp.float32), refb, atol=6e-2, rtol=2e-2)

    # TODO(synk): training-mode dropout (stochastic masking of Y) is not
    # implemented; forward matches the module in eval() mode.
    print("KERNEL_OK")
</pallas_src>

<mosaic_0001>
module attributes {stable_mosaic.version = 11 : i64} {
  func.func @addnorm_kernel(%arg0: i32, %arg1: memref<16x32xf32, #tpu.memory_space<vmem>>, %arg2: memref<16x32xf32, #tpu.memory_space<vmem>>, %arg3: memref<2x32xf32, #tpu.memory_space<vmem>>, %arg4: memref<16x32xf32, #tpu.memory_space<vmem>>) attributes {dimension_semantics = [#tpu.dimension_semantics<parallel>], iteration_bounds = array<i64: 1>, scalar_prefetch = 0 : i64, scratch_operands = 0 : i64, tpu.core_type = #tpu.core_type<tc>, window_params = [{transform_indices = @transform_0, window_bounds = array<i64: 16, 32>}, {transform_indices = @transform_1, window_bounds = array<i64: 16, 32>}, {pipeline_mode = #tpu.pipeline_mode<synchronous>, transform_indices = @transform_2, window_bounds = array<i64: 2, 32>}, {transform_indices = @transform_3, window_bounds = array<i64: 16, 32>}]} {
    %c0 = arith.constant 0 : index
    %c0_0 = arith.constant 0 : index
    %0 = vector.load %arg1[%c0, %c0_0] : memref<16x32xf32, #tpu.memory_space<vmem>>, vector<16x32xf32>
    %c0_1 = arith.constant 0 : index
    %c0_2 = arith.constant 0 : index
    %1 = vector.load %arg2[%c0_1, %c0_2] : memref<16x32xf32, #tpu.memory_space<vmem>>, vector<16x32xf32>
    %2 = arith.addf %0, %1 : vector<16x32xf32>
    %cst = arith.constant dense<0.000000e+00> : vector<16xf32>
    %3 = vector.multi_reduction <add>, %2, %cst [1] : vector<16x32xf32> to vector<16xf32>
    %4 = vector.shape_cast %3 : vector<16xf32> to vector<16x1xf32>
    %cst_3 = arith.constant 3.125000e-02 : f32
    %5 = vector.broadcast %cst_3 : f32 to vector<16x1xf32>
    %6 = arith.mulf %4, %5 : vector<16x1xf32>
    %7 = vector.broadcast %6 : vector<16x1xf32> to vector<16x32xf32>
    %8 = arith.subf %2, %7 : vector<16x32xf32>
    %9 = arith.mulf %8, %8 : vector<16x32xf32>
    %cst_4 = arith.constant dense<0.000000e+00> : vector<16xf32>
    %10 = vector.multi_reduction <add>, %9, %cst_4 [1] : vector<16x32xf32> to vector<16xf32>
    %11 = vector.shape_cast %10 : vector<16xf32> to vector<16x1xf32>
    %cst_5 = arith.constant 3.125000e-02 : f32
    %12 = vector.broadcast %cst_5 : f32 to vector<16x1xf32>
    %13 = arith.mulf %11, %12 : vector<16x1xf32>
    %cst_6 = arith.constant 9.99999974E-6 : f32
    %14 = vector.broadcast %cst_6 : f32 to vector<16x1xf32>
    %15 = arith.addf %13, %14 : vector<16x1xf32>
    %16 = math.rsqrt %15 : vector<16x1xf32>
    %c0_7 = arith.constant 0 : index
    %c0_8 = arith.constant 0 : index
    %17 = vector.load %arg3[%c0_7, %c0_8] : memref<2x32xf32, #tpu.memory_space<vmem>>, vector<2x32xf32>
    %18 = vector.broadcast %16 : vector<16x1xf32> to vector<16x32xf32>
    %19 = arith.mulf %8, %18 : vector<16x32xf32>
    %20 = vector.extract_strided_slice %17 {offsets = [0, 0], sizes = [1, 32], strides = [1, 1]} : vector<2x32xf32> to vector<1x32xf32>
    %21 = vector.broadcast %20 : vector<1x32xf32> to vector<16x32xf32>
    %22 = arith.mulf %19, %21 : vector<16x32xf32>
    %23 = vector.extract_strided_slice %17 {offsets = [1, 0], sizes = [1, 32], strides = [1, 1]} : vector<2x32xf32> to vector<1x32xf32>
    %24 = vector.broadcast %23 : vector<1x32xf32> to vector<16x32xf32>
    %25 = arith.addf %22, %24 : vector<16x32xf32>
    %c0_9 = arith.constant 0 : index
    %c0_10 = arith.constant 0 : index
    %26 = vector.load %arg4[%c0_9, %c0_10] : memref<16x32xf32, #tpu.memory_space<vmem>>, vector<16x32xf32>
    tpu.vector_store %arg4[%c0_9, %c0_10], %25 {strides = array<i32>} : memref<16x32xf32, #tpu.memory_space<vmem>>, vector<16x32xf32>,
    return
  }
  func.func @transform_0(%arg0: i32) -> (i32, i32) {
    %c0_i32 = arith.constant 0 : i32
    %c0_i32_0 = arith.constant 0 : i32
    return %arg0, %c0_i32 : i32, i32
  }
  func.func @transform_1(%arg0: i32) -> (i32, i32) {
    %c0_i32 = arith.constant 0 : i32
    %c0_i32_0 = arith.constant 0 : i32
    return %arg0, %c0_i32 : i32, i32
  }
  func.func @transform_2(%arg0: i32) -> (i32, i32) {
    %c0_i32 = arith.constant 0 : i32
    %c0_i32_0 = arith.constant 0 : i32
    %c0_i32_1 = arith.constant 0 : i32
    return %c0_i32, %c0_i32_0 : i32, i32
  }
  func.func @transform_3(%arg0: i32) -> (i32, i32) {
    %c0_i32 = arith.constant 0 : i32
    %c0_i32_0 = arith.constant 0 : i32
    return %arg0, %c0_i32 : i32, i32
  }
}

</mosaic_0001>

<bundles_post_ra>
// kernel: tpu_custom_call.1
= control target key start
LH: loop header
LB: loop body
LE: loop exit
PB: predicated region body
PF: predicated region fallthrough
CT: control target
= control target key end

     0   :  { %8 = vsyncpa [#allocation3], 0  ;;  %s269_s0 = inlined_call_operand.hbm [shape: f32[16,32], index: 0, kind: input, shape index: {}]   ;;  %s270_s1 = inlined_call_operand.hbm [shape: f32[16,32], index: 1, kind: input, shape index: {}]   ;;  %s271_s2 = inlined_call_operand.vmem [shape: f32[2,32], index: 2, kind: input, shape index: {}]   ;;  %s272_s3 = inlined_call_operand.hbm [shape: f32[16,32], index: 3, kind: output, shape index: {}]  }
   0x1   :  { %9 = vsyncpa [#allocation6], 0 }
   0x2   :  { %10 = vsyncpa [#allocation4], 0  ;;  %s190_s12 = smov [#allocation2]   ;;  %s118_s16 = scalar_lea.hbm %s269_s0, 256 }
   0x3   :  { %s16_s13 = sshll.u32 %s190_s12, 4  ;;  %p119_p0 = scmp.ne.s32.totalorder %s269_s0, %s118_s16  ;;  %s17_s13 = int_to_ptr.vmem [resolvable:$true] %s16_s13 }
   0x4   :  { %p122_p1 = scmp.lt.u32.totalorder %s118_s16, %s269_s0 }
   0x6   :  { %p124_p2 = pnand %p122_p1, %p119_p0 }
   0x8   :  { %127 = shalt.err (!%p124_p2)
}
   0x9   :  { %s128_s21 = scalar_lea.vmem %s17_s13, 256  ;;  %p133_p4 = scmp.lt.s32.totalorder %s17_s13, %s17_s13 }
   0xa   :  { %p129_p3 = scmp.ne.s32.totalorder %s17_s13, %s128_s21  ;;  %p134_p5 = scmp.lt.s32.totalorder %s128_s21, %s128_s21 }
   0xc   :  { %p135_p6 = por %p134_p5, %p133_p4 }
   0xe   :  { %p136_p7 = pnand %p135_p6, %p129_p3 }
  0x10   :  { %139 = shalt.err (!%p136_p7)
}
  0x11   :  { %s191_s22 = smov 128   ;;  %s192_s23 = smov 8  }
  0x12   :  { %22 = dma.hbm_to_vmem [thread:$0]  %s269_s0, 256, %s17_s13, [#allocation3], %s191_s22, %s191_s22, %s192_s23  }
  0x13   :  { %s193_s26 = smov [#allocation5]   ;;  %s140_s30 = scalar_lea.hbm %s270_s1, 256 }
  0x14   :  { %s28_s27 = sshll.u32 %s193_s26, 4  ;;  %p141_p8 = scmp.ne.s32.totalorder %s270_s1, %s140_s30  ;;  %s29_s27 = int_to_ptr.vmem [resolvable:$true] %s28_s27 }
  0x15   :  { %p144_p9 = scmp.lt.u32.totalorder %s140_s30, %s270_s1 }
  0x17   :  { %p146_p10 = pnand %p144_p9, %p141_p8 }
  0x19   :  { %149 = shalt.err (!%p146_p10)
}
  0x1a   :  { %s150_s8 = scalar_lea.vmem %s29_s27, 256  ;;  %p155_p12 = scmp.lt.s32.totalorder %s29_s27, %s29_s27 }
  0x1b   :  { %p151_p11 = scmp.ne.s32.totalorder %s29_s27, %s150_s8  ;;  %p156_p13 = scmp.lt.s32.totalorder %s150_s8, %s150_s8 }
  0x1d   :  { %p157_p0 = por %p156_p13, %p155_p12 }
  0x1f   :  { %p158_p1 = pnand %p157_p0, %p151_p11 }
  0x21   :  { %161 = shalt.err (!%p158_p1)
}
  0x22   :  { %34 = dma.hbm_to_vmem [thread:$0]  %s270_s1, 256, %s29_s27, [#allocation6], %s191_s22, %s191_s22, %s192_s23  }
  0x23   :  { %184 = dma.done.wait [#allocation3], 256  }
  0x24   :  { %185 = vsyncadd [#allocation3], 4294967040 }
  0x25   :  { %186 = dma.done.wait [#allocation6], 256  }
  0x26   :  { %187 = vsyncadd [#allocation6], 4294967040  ;;  %v43_v0 = vld [vmem:[#allocation2] sm:$0xff]  ;;  %v45_v1 = vld [vmem:[#allocation5] sm:$0xff]  ;;  %vm49_vm0 = vcmask 261120   ;;  %v77_v20 = vlaneseq  ;;  %s194_s11 = smov [#allocation7]  }
  0x27   :  { %v44_v2 = vld [vmem:[#allocation2 + $0x8] sm:$0xff]  ;;  %v47_v3 = vadd.f32 %v45_v1, %v43_v0  ;;  %v46_v4 = vld [vmem:[#allocation5 + $0x8] sm:$0xff]  ;;  %v74_v27 = vld [vmem:[%s271_s2] sm:$0x3]  ;;  %s96_s12 = sshll.u32 %s194_s11, 4  ;;  %s97_s12 = int_to_ptr.vmem [resolvable:$true] %s96_s12 }
  0x28   :  { %v48_v5 = vadd.f32 %v46_v4, %v44_v2  ;;  %v78_v24 = vshrl.u32 %v77_v20, 7  ;;  %s162_s13 = scalar_lea.vmem %s97_s12, 256  ;;  %p167_p3 = scmp.lt.s32.totalorder %s97_s12, %s97_s12 }
  0x29   :  { %v50_v6 = vsel %vm49_vm0, %v47_v3, 0.0  ;;  %p163_p2 = scmp.ne.s32.totalorder %s97_s12, %s162_s13  ;;  %p168_p4 = scmp.lt.s32.totalorder %s162_s13, %s162_s13 }
  0x2a   :  { %51 = vadd.xlane.f32.xlu0 %v50_v6  ;;  %v53_v7 = vsel %vm49_vm0, %v48_v5, 0.0  ;;  %v79_v26 = vsub.s32 0, %v78_v24  ;;  %v85_v28 = vsub.s32 1, %v78_v24 }
  0x2b   :  { %p169_p5 = por %p168_p4, %p167_p3 }
  0x2c   :  { %v80_v29 = vrot.slane %v74_v27, %v79_v26  ;;  %v86_v32 = vrot.slane %v74_v27, %v85_v28 }
  0x2d   :  { %p170_p6 = pnand %p169_p5, %p163_p2 }
  0x2e   :  { %54 = vadd.xlane.f32.xlu0 %v53_v7 }
  0xb7   :  { %v52_v8 = vpop.xlane.xlu0 %51 }
  0xb8   :  { %v56_v9 = vmul.f32 0.03125, %v52_v8 }
  0xba   :  { %v58_v10 = vsub.f32 %v47_v3, %v56_v9 }
  0xbb   :  { %v55_v11 = vpop.xlane.xlu0 %54 }
  0xbc   :  { %v57_v12 = vmul.f32 0.03125, %v55_v11  ;;  %v60_v13 = vmul.f32 %v58_v10, %v58_v10 }
  0xbe   :  { %v59_v14 = vsub.f32 %v48_v5, %v57_v12  ;;  %v62_v15 = vsel %vm49_vm0, %v60_v13, 0.0 }
  0xbf   :  { %63 = vadd.xlane.f32.xlu1 %v62_v15 }
  0xc0   :  { %v61_v16 = vmul.f32 %v59_v14, %v59_v14 }
  0xc2   :  { %v65_v17 = vsel %vm49_vm0, %v61_v16, 0.0 }
  0xc3   :  { %66 = vadd.xlane.f32.xlu1 %v65_v17 }
 0x14c   :  { %v64_v18 = vpop.xlane.xlu1 %63 }
 0x14d   :  { %v68_v19 = vmul.f32 0.03125, %v64_v18 }
 0x14f   :  { %v70_v21 = vadd.f32 1e-05, %v68_v19 }
 0x150   :  { %v67_v22 = vpop.xlane.xlu1 %66 }
 0x151   :  { %114 = vrsqrt.f32 %v70_v21  ;;  %v69_v23 = vmul.f32 0.03125, %v67_v22 }
 0x153   :  { %v71_v25 = vadd.f32 1e-05, %v69_v23 }
 0x155   :  { %116 = vrsqrt.f32 %v71_v25 }
 0x15b   :  { %v115_v30 = vpop.eup %114 }
 0x15c   :  { %v75_v31 = vmul.f32 %v115_v30, %v58_v10 }
 0x15e   :  { %v81_v33 = vmul.f32 %v80_v29, %v75_v31 }
 0x15f   :  { %v117_v34 = vpop.eup %116 }
 0x160   :  { %v76_v35 = vmul.f32 %v117_v34, %v59_v14  ;;  %v87_v36 = vadd.f32 %v86_v32, %v81_v33 }
 0x162   :  { %v82_v37 = vmul.f32 %v80_v29, %v76_v35  ;;  %89 = vst.msk [vmem:[#allocation7] sm:$0xff] %vm49_vm0, %v87_v36 }
 0x164   :  { %v88_v38 = vadd.f32 %v86_v32, %v82_v37 }
 0x166   :  { %90 = vst.msk [vmem:[#allocation7 + $0x8] sm:$0xff] %vm49_vm0, %v88_v38 }
 0x167   :  { %173 = shalt.err (!%p170_p6)
}
 0x168   :  { %s174_s15 = scalar_lea.hbm %s272_s3, 256 }
 0x169   :  { %p175_p7 = scmp.ne.s32.totalorder %s272_s3, %s174_s15  ;;  %p178_p8 = scmp.lt.u32.totalorder %s174_s15, %s272_s3 }
 0x16b   :  { %p180_p9 = pnand %p178_p8, %p175_p7 }
 0x16d   :  { %183 = shalt.err (!%p180_p9)
}
 0x16e   :  { %102 = dma.vmem_to_hbm [thread:$0]  %s97_s12, 256, %s272_s3, [#allocation4], %s191_s22, %s191_s22, %s192_s23  }
 0x16f   :  { %188 = dma.done.wait [#allocation4], 256  }
 0x170   :  { %189 = vsyncadd [#allocation4], 4294967040 }
 0x171   :  { %106 = vsyncpa [#allocation3], 1 }
 0x172   :  { %107 = vsyncpa [#allocation6], 1 }
 0x173   :  { %108 = vsyncpa [#allocation4], 1 }

</bundles_post_ra>
